<compile_context>
chip_gen: v6e
topology: v6e:2x2x1
jax: 0.10.0
libtpu: 0.0.40
codegen_flags: <defaults>
</compile_context>

<pallas_src>
import jax
import jax.numpy as jnp
from jax.experimental import pallas as pl
from jax.experimental.pallas import tpu as pltpu


# ------------------------------- kernels -----------------------------------

def _se_fused_kernel(x_ref, w1t_ref, w2t_ref, o_ref):
    """Fused squeeze -> excite -> scale on a (TB, C, HW) block."""
    hw = x_ref.shape[-1]
    # squeeze: spatial mean accumulated in f32
    # TODO(synk): verify via pl.lower_as_mlir that the f32-accumulated reduce
    # of a bf16 tile does not materialize a full-tile f32 temporary.
    y = jnp.sum(x_ref[...], axis=-1, dtype=jnp.float32) * (1.0 / hw)   # (TB, C)
    # excite: FC -> ReLU -> FC -> sigmoid (MXU + EUP, negligible vs. DMA)
    h = jnp.maximum(
        jnp.dot(y, w1t_ref[...], preferred_element_type=jnp.float32), 0.0)
    s = jax.nn.sigmoid(
        jnp.dot(h, w2t_ref[...], preferred_element_type=jnp.float32))
    # scale: re-index x_ref (cheap VMEM reload) so the tile is not kept live
    # across the reduce/matmuls; multiply in the output dtype.
    o_ref[...] = (x_ref[...] * s[:, :, None].astype(o_ref.dtype)).astype(o_ref.dtype)


def _squeeze_kernel(x_ref, y_ref):
    """(1, TC, HW) block -> per-channel spatial mean (1, TC, 1) in f32."""
    hw = x_ref.shape[-1]
    y_ref[...] = (jnp.sum(x_ref[...], axis=-1, keepdims=True,
                          dtype=jnp.float32) * (1.0 / hw))


def _rescale_kernel(x_ref, s_ref, o_ref):
    """(1, TC, HW) block * (1, TC, 1) per-channel scale."""
    o_ref[...] = (x_ref[...] * s_ref[...].astype(o_ref.dtype)).astype(o_ref.dtype)


# ------------------------------- helpers ------------------------------------

def _round_up(v, m):
    return (v + m - 1) // m * m


def _padded_block_bytes(dim_sub, dim_lane, itemsize):
    """VMEM footprint of a trailing-2-D tile: second-to-last dim padded to the
    dtype's sublane multiple, last dim padded to 128 lanes."""
    sublane = 8 * max(1, 4 // itemsize)       # f32: 8, bf16: 16, int8/fp8: 32
    return _round_up(dim_sub, sublane) * _round_up(dim_lane, 128) * itemsize


def _vmem_capacity_bytes():
    try:
        return int(pltpu.get_tpu_info().vmem_capacity_bytes)
    except Exception:
        return 64 << 20        # conservative default (v7x per-TensorCore VMEM)


def _choose_tb(batch, per_image_bytes, target_bytes, min_block_bytes=1 << 20):
    """Largest batch-divisor whose block fits `target_bytes`, but prefer enough
    grid steps (>=8, then >=4, then >=2) to keep both TensorCores' DMA
    pipelines overlapped, as long as the block stays above ~1 MiB (or is the
    largest we can make anyway)."""
    divisors = [d for d in range(1, batch + 1) if batch % d == 0]
    fitting = [d for d in divisors if d * per_image_bytes <= target_bytes] or [1]
    best = max(fitting)
    floor = min(min_block_bytes, best * per_image_bytes)
    for min_steps in (8, 4, 2):
        cand = [d for d in fitting
                if batch // d >= min_steps and d * per_image_bytes >= floor]
        if cand:
            return max(cand)
    return best


# ------------------------------- wrappers ------------------------------------

def _se_layer_tiled(x2, w1t, w2t, *, capacity, tile_c=None, donate_x=False):
    """Two-sweep fallback for images whose (1, C, HW) block does not fit VMEM
    (mainly v7x, 64 MiB/TC): channel-chunked Pallas squeeze -> tiny excite on a
    (B, C) vector -> channel-chunked Pallas rescale.  ~1.5x the HBM traffic of
    the fused path instead of failing."""
    B, C, HW = x2.shape
    itemsize = jnp.dtype(x2.dtype).itemsize
    target = capacity // 8
    headroom = 4 << 20

    if tile_c is not None:
        tc = int(tile_c)
    elif C % 8 == 0:
        cands = [d for d in range(8, C + 1, 8)
                 if C % d == 0
                 and _padded_block_bytes(d, HW, itemsize) <= target]
        tc = max(cands) if cands else 8
    else:
        tc = C
    assert C % tc == 0, "tile_c must divide C"
    grid = (B, C // tc)
    blk_vmem = _padded_block_bytes(tc, HW, itemsize)

    # ---- sweep 1: per-channel spatial means ---------------------------------
    vmem_sq = int(min(int(0.9 * capacity),
                      max(2 * blk_vmem + headroom, 32 << 20)))
    y = pl.pallas_call(
        _squeeze_kernel,
        out_shape=jax.ShapeDtypeStruct((B, C, 1), jnp.float32),
        grid_spec=pltpu.PrefetchScalarGridSpec(
            num_scalar_prefetch=0,
            grid=grid,
            in_specs=[pl.BlockSpec((1, tc, HW), lambda b, c: (b, c, 0))],
            out_specs=pl.BlockSpec((1, tc, 1), lambda b, c: (b, c, 0)),
        ),
        compiler_params=pltpu.CompilerParams(
            dimension_semantics=("parallel", "parallel"),
            vmem_limit_bytes=vmem_sq,
        ),
        cost_estimate=pl.CostEstimate(
            flops=int(B * C * HW),
            transcendentals=0,
            bytes_accessed=int(B * C * HW * itemsize + B * C * 4),
        ),
    )(x2)

    # ---- excite: FC -> ReLU -> FC -> sigmoid on a (B, C) vector -------------
    # O(B*C*C/r) flops on a few-KB operand: negligible next to the two HBM
    # sweeps over x, so this glue stays in plain JAX (the fused path does it
    # in-kernel).
    yv = y[:, :, 0]                                          # (B, C) f32
    h = jnp.maximum(jnp.dot(yv, w1t.astype(jnp.float32)), 0.0)
    s = jax.nn.sigmoid(jnp.dot(h, w2t.astype(jnp.float32)))
    s3 = s[:, :, None]                                       # (B, C, 1) f32

    # ---- sweep 2: rescale ----------------------------------------------------
    vmem_rs = int(min(int(0.9 * capacity),
                      max(4 * blk_vmem + headroom, 32 << 20)))
    out2 = pl.pallas_call(
        _rescale_kernel,
        out_shape=jax.ShapeDtypeStruct(x2.shape, x2.dtype),
        grid_spec=pltpu.PrefetchScalarGridSpec(
            num_scalar_prefetch=0,
            grid=grid,
            in_specs=[pl.BlockSpec((1, tc, HW), lambda b, c: (b, c, 0)),
                      pl.BlockSpec((1, tc, 1), lambda b, c: (b, c, 0))],
            out_specs=pl.BlockSpec((1, tc, HW), lambda b, c: (b, c, 0)),
        ),
        compiler_params=pltpu.CompilerParams(
            dimension_semantics=("parallel", "parallel"),
            vmem_limit_bytes=vmem_rs,
        ),
        cost_estimate=pl.CostEstimate(
            flops=int(B * C * HW),
            transcendentals=0,
            bytes_accessed=int(2 * B * C * HW * itemsize + B * C * 4),
        ),
        input_output_aliases=({0: 0} if donate_x else {}),
    )(x2, s3)
    return out2


def se_layer(x, w1, w2, *, force_tiled=False, tile_c=None, donate_x=False):
    """SELayer forward.

    x:  (B, C, H, W) NCHW
    w1: (C//r, C)   first Linear weight (PyTorch layout)
    w2: (C, C//r)   second Linear weight (PyTorch layout)
    """
    B, C, H, W = x.shape
    HW = H * W
    itemsize = jnp.dtype(x.dtype).itemsize

    # Free view — no transposes anywhere (the old NHWC "lane-dense" path cost
    # ~4 extra full HBM passes and was removed).
    x2 = x.reshape(B, C, HW)

    w1t = jnp.asarray(w1).T                                  # (C, Cr)
    w2t = jnp.asarray(w2).T                                  # (Cr, C)
    w_itemsize = jnp.dtype(w1t.dtype).itemsize

    capacity = _vmem_capacity_bytes()
    target = capacity // 8                                   # preferred block
    headroom = 4 << 20

    w_vmem = (_padded_block_bytes(w1t.shape[0], w1t.shape[1], w_itemsize)
              + _padded_block_bytes(w2t.shape[0], w2t.shape[1], w_itemsize))
    per_image_vmem = _padded_block_bytes(C, HW, itemsize)

    # Largest single-image block for which in+out double-buffering plus
    # (double-buffered) weights still fits under the clamped VMEM limit.
    fused_limit = (int(0.9 * capacity) - 2 * w_vmem - headroom) // 4

    if force_tiled or per_image_vmem > fused_limit:
        out2 = _se_layer_tiled(x2, w1t, w2t, capacity=capacity,
                               tile_c=tile_c, donate_x=donate_x)
        return out2.reshape(B, C, H, W)

    tb = _choose_tb(B, per_image_vmem, target)
    grid = (B // tb,)
    block_vmem = tb * per_image_vmem
    vmem_limit = int(min(int(0.9 * capacity),
                         max(4 * block_vmem + 2 * w_vmem + headroom, 32 << 20)))

    Cr = w1t.shape[1]
    cost = pl.CostEstimate(
        flops=int(2 * B * C * HW + 4 * B * C * Cr),          # reduce + rescale + FCs
        transcendentals=int(B * C),                          # sigmoid
        bytes_accessed=int(2 * B * C * HW * itemsize
                           + (w1t.size + w2t.size) * w_itemsize),
    )

    out2 = pl.pallas_call(
        _se_fused_kernel,
        out_shape=jax.ShapeDtypeStruct(x2.shape, x.dtype),
        grid_spec=pltpu.PrefetchScalarGridSpec(
            num_scalar_prefetch=0,
            grid=grid,
            in_specs=[
                pl.BlockSpec((tb, C, HW), lambda b: (b, 0, 0)),
                # Weights use a constant index_map so they are fetched once;
                # pl.Buffered(1) would free one weight copy of VMEM but
                # single-buffered pipeline modes are left at the default to
                # keep lowering robust (footprint is tiny anyway).
                pl.BlockSpec(w1t.shape, lambda b: (0, 0)),
                pl.BlockSpec(w2t.shape, lambda b: (0, 0)),
            ],
            out_specs=pl.BlockSpec((tb, C, HW), lambda b: (b, 0, 0)),
        ),
        compiler_params=pltpu.CompilerParams(
            dimension_semantics=("parallel",),
            vmem_limit_bytes=vmem_limit,
        ),
        cost_estimate=cost,
        input_output_aliases=({0: 0} if donate_x else {}),
    )(x2, w1t, w2t)

    return out2.reshape(B, C, H, W)


def se_layer_ref(x, w1, w2):
    """Pure-JAX reference matching the PyTorch forward (f32 math)."""
    xf = x.astype(jnp.float32)
    y = jnp.mean(xf, axis=(2, 3))                            # (B, C)
    y = jnp.maximum(y @ w1.astype(jnp.float32).T, 0.0)       # (B, Cr)
    y = jax.nn.sigmoid(y @ w2.astype(jnp.float32).T)         # (B, C)
    return xf * y[:, :, None, None]


if __name__ == "__main__":
    key = jax.random.PRNGKey(0)
    k_x, k_w1, k_w2, k_x2, k_x3 = jax.random.split(key, 5)
    reduction = 16

    # --- test 1: f32, HW multiple of 128 (fused path) ------------------------
    B, C, H, W = 2, 64, 16, 16
    Cr = C // reduction                                       # 4
    x = jax.random.normal(k_x, (B, C, H, W), dtype=jnp.float32)
    w1 = jax.random.normal(k_w1, (Cr, C), dtype=jnp.float32) / jnp.sqrt(C)
    w2 = jax.random.normal(k_w2, (C, Cr), dtype=jnp.float32) / jnp.sqrt(Cr)

    out = jax.block_until_ready(se_layer(x, w1, w2))
    ref = se_layer_ref(x, w1, w2)
    assert out.shape == (B, C, H, W)
    assert jnp.allclose(out, ref, atol=1e-5, rtol=1e-5)

    # --- test 2: bf16, HW=49 (masked lanes, fused path, no transposes) -------
    B2, C2, H2, W2 = 4, 128, 7, 7
    Cr2 = C2 // reduction                                     # 8
    xb = jax.random.normal(k_x2, (B2, C2, H2, W2), dtype=jnp.float32)
    xb16 = xb.astype(jnp.bfloat16)
    w1b = jax.random.normal(k_w1, (Cr2, C2), dtype=jnp.float32) / jnp.sqrt(C2)
    w2b = jax.random.normal(k_w2, (C2, Cr2), dtype=jnp.float32) / jnp.sqrt(Cr2)

    outb = jax.block_until_ready(se_layer(xb16, w1b, w2b))
    refb = se_layer_ref(xb16, w1b, w2b)
    assert outb.shape == (B2, C2, H2, W2)
    assert outb.dtype == jnp.bfloat16
    assert jnp.allclose(outb.astype(jnp.float32), refb, atol=3e-2, rtol=3e-2)

    # --- test 3: forced channel-chunked two-sweep path (v7x large-image
    #     fallback), exercised at a small shape for correctness --------------
    B3, C3, H3, W3 = 2, 32, 8, 8
    Cr3 = C3 // reduction                                     # 2
    x3 = jax.random.normal(k_x3, (B3, C3, H3, W3), dtype=jnp.float32)
    w13 = jax.random.normal(k_w1, (Cr3, C3), dtype=jnp.float32) / jnp.sqrt(C3)
    w23 = jax.random.normal(k_w2, (C3, Cr3), dtype=jnp.float32) / jnp.sqrt(Cr3)

    out3 = jax.block_until_ready(se_layer(x3, w13, w23,
                                          force_tiled=True, tile_c=8))
    ref3 = se_layer_ref(x3, w13, w23)
    assert out3.shape == (B3, C3, H3, W3)
    assert jnp.allclose(out3, ref3, atol=1e-5, rtol=1e-5)

    print("KERNEL_OK")
</pallas_src>

<mosaic_0001>
module attributes {stable_mosaic.version = 11 : i64} {
  func.func @_se_fused_kernel(%arg0: i32, %arg1: memref<2x64x256xf32, #tpu.memory_space<vmem>>, %arg2: memref<64x4xf32, #tpu.memory_space<vmem>>, %arg3: memref<4x64xf32, #tpu.memory_space<vmem>>, %arg4: memref<2x64x256xf32, #tpu.memory_space<vmem>>) attributes {dimension_semantics = [#tpu.dimension_semantics<parallel>], iteration_bounds = array<i64: 1>, scalar_prefetch = 0 : i64, scratch_operands = 0 : i64, tpu.core_type = #tpu.core_type<tc>, window_params = [{transform_indices = @transform_0, window_bounds = array<i64: 2, 64, 256>}, {pipeline_mode = #tpu.pipeline_mode<synchronous>, transform_indices = @transform_1, window_bounds = array<i64: 64, 4>}, {pipeline_mode = #tpu.pipeline_mode<synchronous>, transform_indices = @transform_2, window_bounds = array<i64: 4, 64>}, {transform_indices = @transform_3, window_bounds = array<i64: 2, 64, 256>}]} {
    %c0 = arith.constant 0 : index
    %c0_0 = arith.constant 0 : index
    %c0_1 = arith.constant 0 : index
    %0 = vector.load %arg1[%c0, %c0_0, %c0_1] : memref<2x64x256xf32, #tpu.memory_space<vmem>>, vector<2x64x256xf32>
    %cst = arith.constant dense<0.000000e+00> : vector<2x64xf32>
    %1 = vector.multi_reduction <add>, %0, %cst [2] : vector<2x64x256xf32> to vector<2x64xf32>
    %cst_2 = arith.constant 3.906250e-03 : f32
    %2 = vector.broadcast %cst_2 : f32 to vector<2x64xf32>
    %3 = arith.mulf %1, %2 : vector<2x64xf32>
    %c0_3 = arith.constant 0 : index
    %c0_4 = arith.constant 0 : index
    %4 = vector.load %arg2[%c0_3, %c0_4] : memref<64x4xf32, #tpu.memory_space<vmem>>, vector<64x4xf32>
    %cst_5 = arith.constant dense<0.000000e+00> : vector<2x4xf32>
    %5 = tpu.matmul %3, %4, %cst_5 {dimension_numbers = #tpu.dot_dimension_numbers<[1], [0], [0], [1], [0, 0, 1, 1], [], []>} : vector<2x64xf32>, vector<64x4xf32>, vector<2x4xf32> -> vector<2x4xf32>
    %cst_6 = arith.constant 0.000000e+00 : f32
    %6 = vector.broadcast %cst_6 : f32 to vector<2x4xf32>
    %7 = arith.maximumf %5, %6 : vector<2x4xf32>
    %c0_7 = arith.constant 0 : index
    %c0_8 = arith.constant 0 : index
    %8 = vector.load %arg3[%c0_7, %c0_8] : memref<4x64xf32, #tpu.memory_space<vmem>>, vector<4x64xf32>
    %cst_9 = arith.constant dense<0.000000e+00> : vector<2x64xf32>
    %9 = tpu.matmul %7, %8, %cst_9 {dimension_numbers = #tpu.dot_dimension_numbers<[1], [0], [0], [1], [0, 0, 1, 1], [], []>} : vector<2x4xf32>, vector<4x64xf32>, vector<2x64xf32> -> vector<2x64xf32>
    %10 = arith.negf %9 : vector<2x64xf32>
    %11 = math.exp %10 : vector<2x64xf32>
    %cst_10 = arith.constant 1.000000e+00 : f32
    %12 = vector.broadcast %cst_10 : f32 to vector<2x64xf32>
    %13 = arith.addf %12, %11 : vector<2x64xf32>
    %14 = arith.divf %12, %13 : vector<2x64xf32>
    %c0_11 = arith.constant 0 : index
    %c0_12 = arith.constant 0 : index
    %c0_13 = arith.constant 0 : index
    %15 = vector.load %arg1[%c0_11, %c0_12, %c0_13] : memref<2x64x256xf32, #tpu.memory_space<vmem>>, vector<2x64x256xf32>
    %16 = vector.shape_cast %14 : vector<2x64xf32> to vector<2x64x1xf32>
    %17 = vector.broadcast %16 : vector<2x64x1xf32> to vector<2x64x256xf32>
    %18 = arith.mulf %15, %17 : vector<2x64x256xf32>
    %c0_14 = arith.constant 0 : index
    %c0_15 = arith.constant 0 : index
    %c0_16 = arith.constant 0 : index
    %19 = vector.load %arg4[%c0_14, %c0_15, %c0_16] : memref<2x64x256xf32, #tpu.memory_space<vmem>>, vector<2x64x256xf32>
    tpu.vector_store %arg4[%c0_14, %c0_15, %c0_16], %18 {strides = array<i32>} : memref<2x64x256xf32, #tpu.memory_space<vmem>>, vector<2x64x256xf32>,
    return
  }
  func.func @transform_0(%arg0: i32) -> (i32, i32, i32) {
    %c0_i32 = arith.constant 0 : i32
    %c0_i32_0 = arith.constant 0 : i32
    %c0_i32_1 = arith.constant 0 : i32
    return %arg0, %c0_i32, %c0_i32_0 : i32, i32, i32
  }
  func.func @transform_1(%arg0: i32) -> (i32, i32) {
    %c0_i32 = arith.constant 0 : i32
    %c0_i32_0 = arith.constant 0 : i32
    %c0_i32_1 = arith.constant 0 : i32
    return %c0_i32, %c0_i32_0 : i32, i32
  }
  func.func @transform_2(%arg0: i32) -> (i32, i32) {
    %c0_i32 = arith.constant 0 : i32
    %c0_i32_0 = arith.constant 0 : i32
    %c0_i32_1 = arith.constant 0 : i32
    return %c0_i32, %c0_i32_0 : i32, i32
  }
  func.func @transform_3(%arg0: i32) -> (i32, i32, i32) {
    %c0_i32 = arith.constant 0 : i32
    %c0_i32_0 = arith.constant 0 : i32
    %c0_i32_1 = arith.constant 0 : i32
    return %arg0, %c0_i32, %c0_i32_0 : i32, i32, i32
  }
}

</mosaic_0001>

<bundles_post_ra>
// kernel: tpu_custom_call.1
= control target key start
LH: loop header
LB: loop body
LE: loop exit
PB: predicated region body
PF: predicated region fallthrough
CT: control target
= control target key end

     0   :  { %8 = vsyncpa [#allocation3], 0  ;;  %s865_s0 = inlined_call_operand.hbm [shape: f32[2,64,256], index: 0, kind: input, shape index: {}]   ;;  %s866_s1 = inlined_call_operand.vmem [shape: f32[64,4], index: 1, kind: input, shape index: {}]   ;;  %s867_s2 = inlined_call_operand.vmem [shape: f32[4,64], index: 2, kind: input, shape index: {}]   ;;  %s868_s3 = inlined_call_operand.hbm [shape: f32[2,64,256], index: 3, kind: output, shape index: {}]  }
   0x1   :  { %9 = vsyncpa [#allocation4], 0  ;;  %s648_s12 = smov [#allocation2]  }
   0x2   :  { %s15_s13 = sshll.u32 %s648_s12, 4  ;;  %s16_s13 = int_to_ptr.vmem [resolvable:$true] %s15_s13 }
   0x3   :  { %s612_s14 = scalar_lea.vmem %s16_s13, 4096  ;;  %p617_p1 = scmp.lt.s32.totalorder %s16_s13, %s16_s13 }
   0x4   :  { %p613_p0 = scmp.ne.s32.totalorder %s16_s13, %s612_s14  ;;  %p618_p2 = scmp.lt.s32.totalorder %s612_s14, %s612_s14 }
   0x6   :  { %p619_p3 = por %p618_p2, %p617_p1 }
   0x8   :  { %p620_p4 = pnand %p619_p3, %p613_p0 }
   0xa   :  { %623 = shalt.err (!%p620_p4)
}
   0xb   :  { %s649_s15 = smov 256   ;;  %s650_s16 = smov 16  }
   0xc   :  { %21 = dma.hbm_to_vmem [thread:$0]  %s865_s0, 4096, %s16_s13, [#allocation3], %s649_s15, %s649_s15, %s650_s16  }
   0xd   :  { %644 = dma.done.wait [#allocation3], 4096  }
   0xe   :  { %645 = vsyncadd [#allocation3], 4294963200  ;;  %v680_v0 = vld [vmem:[#allocation2 + $0x80] sm:$0xff]  ;;  %v682_v1 = vld [vmem:[#allocation2 + $0x88] sm:$0xff]  ;;  %v651_v48 = vmov 0.0   ;;  %vm652_vm0 = vmmov 0   ;;  %v149_v61 = vlaneseq }
   0xf   :  { %v684_v2 = vld [vmem:[#allocation2] sm:$0xff]  ;;  %v85_v3 = vadd.f32 %v682_v1, %v680_v0  ;;  %v688_v4 = vld [vmem:[#allocation2 + $0x8] sm:$0xff]  ;;  %v690_v5 = vld [vmem:[#allocation2 + $0x90] sm:$0xff]  ;;  %570 = vmatprep.subr.mxu0 %v651_v48  ;;  %589 = vmatprep.subr.mxu1 %v651_v48  ;;  %vm160_vm1 = vcmask 130112   ;;  %vm167_vm2 = vcmask 195712   ;;  %vm174_vm3 = vcmask 261312  }
  0x10   :  { %v692_v6 = vld [vmem:[#allocation2 + $0x98] sm:$0xff]  ;;  %v61_v7 = vadd.f32 %v688_v4, %v684_v2  ;;  %v696_v8 = vld [vmem:[#allocation2 + $0x10] sm:$0xff]  ;;  %v704_v12 = vld [vmem:[#allocation2 + $0xa0] sm:$0xff]  ;;  %586 = vmatprep.mubr.msk.f32.mxu0 %vm652_vm0, %v651_v48  ;;  %591 = vmatprep.mubr.msk.f32.mxu1 %vm652_vm0, %v651_v48  ;;  %vm181_vm4 = vcmask 326912   ;;  %vm188_vm5 = vcmask 392512   ;;  %vm195_vm6 = vcmask 458112  }
  0x11   :  { %v698_v9 = vld [vmem:[#allocation2 + $0x18] sm:$0xff]  ;;  %86 = vadd.xlane.f32.xlu1 %v85_v3  ;;  %v88_v10 = vadd.f32 %v692_v6, %v690_v5  ;;  %v706_v13 = vld [vmem:[#allocation2 + $0xa8] sm:$0xff]  ;;  %v708_v14 = vld [vmem:[#allocation2 + $0x20] sm:$0xff]  ;;  %v150_v3 = vand.u32 127, %v149_v61  ;;  %vm202_vm7 = vcmask 523712   ;;  %vm243_vm8 = vcmask 1041409  }
  0x12   :  { %62 = vadd.xlane.f32.xlu0 %v61_v7  ;;  %v64_v11 = vadd.f32 %v698_v9, %v696_v8  ;;  %v710_v15 = vld [vmem:[#allocation2 + $0x28] sm:$0xff]  ;;  %v91_v16 = vadd.f32 %v706_v13, %v704_v12  ;;  %v716_v18 = vld [vmem:[#allocation2 + $0xb0] sm:$0xff]  ;;  %v718_v19 = vld [vmem:[#allocation2 + $0xb8] sm:$0xff]  ;;  %vm245_vm9 = vcmask 523264   ;;  %vm324_vm10 = vcmask 1043456  }
  0x13   :  { %v67_v17 = vadd.f32 %v710_v15, %v708_v14  ;;  %876 = vst [vmem:[#allocation8_spill] sm:$0xff] %v718_v19  ;;  %v720_v20 = vld [vmem:[#allocation2 + $0x30] sm:$0xff]  ;;  %v722_v21 = vld [vmem:[#allocation2 + $0x38] sm:$0xff]  ;;  %v94_v22 = vadd.f32 %v718_v19, %v716_v18  ;;  %v728_v24 = vld [vmem:[#allocation2 + $0xc0] sm:$0xff]  ;;  %vm320_vm11 = vcmask 31744  }
  0x14   :  { %v70_v23 = vadd.f32 %v722_v21, %v720_v20  ;;  %v730_v25 = vld [vmem:[#allocation2 + $0xc8] sm:$0xff]  ;;  %v732_v26 = vld [vmem:[#allocation2 + $0x40] sm:$0xff]  ;;  %v740_v30 = vld [vmem:[#allocation2 + $0xd0] sm:$0xff] }
  0x15   :  { %89 = vadd.xlane.f32.xlu1 %v88_v10  ;;  %v734_v27 = vld [vmem:[#allocation2 + $0x48] sm:$0xff]  ;;  %v97_v28 = vadd.f32 %v730_v25, %v728_v24  ;;  %877 = vst [vmem:[#allocation9_spill] sm:$0xff] %v740_v30  ;;  %v742_v31 = vld [vmem:[#allocation2 + $0xd8] sm:$0xff]  ;;  %v744_v32 = vld [vmem:[#allocation2 + $0x50] sm:$0xff]  ;;  %v800_v10 = vshrl.u32 %v149_v61, 7 }
  0x16   :  { %65 = vadd.xlane.f32.xlu0 %v64_v11  ;;  %v73_v29 = vadd.f32 %v734_v27, %v732_v26  ;;  %878 = vst [vmem:[#allocation10_spill] sm:$0xff] %v742_v31  ;;  %v746_v33 = vld [vmem:[#allocation2 + $0x58] sm:$0xff]  ;;  %v100_v34 = vadd.f32 %v742_v31, %v740_v30  ;;  %v752_v36 = vld [vmem:[#allocation2 + $0xe0] sm:$0xff]  ;;  %v754_v37 = vld [vmem:[#allocation2 + $0xe8] sm:$0xff] }
  0x17   :  { %v76_v35 = vadd.f32 %v746_v33, %v744_v32  ;;  %879 = vst [vmem:[#allocation11_spill] sm:$0xff] %v752_v36  ;;  %880 = vst [vmem:[#allocation12_spill] sm:$0xff] %v754_v37  ;;  %v756_v38 = vld [vmem:[#allocation2 + $0x60] sm:$0xff]  ;;  %v758_v39 = vld [vmem:[#allocation2 + $0x68] sm:$0xff]  ;;  %v103_v40 = vadd.f32 %v754_v37, %v752_v36 }
  0x18   :  { %v79_v41 = vadd.f32 %v758_v39, %v756_v38  ;;  %v764_v42 = vld [vmem:[#allocation2 + $0xf0] sm:$0xff]  ;;  %v766_v43 = vld [vmem:[#allocation2 + $0xf8] sm:$0xff]  ;;  %v130_v51 = vld [vmem:[%s866_s1 + $0x28] sm:$0xff] }
  0x19   :  { %92 = vadd.xlane.f32.xlu1 %v91_v16  ;;  %881 = vst [vmem:[#allocation13_spill] sm:$0xff] %v764_v42  ;;  %882 = vst [vmem:[#allocation14_spill] sm:$0xff] %v766_v43  ;;  %v768_v44 = vld [vmem:[#allocation2 + $0x70] sm:$0xff]  ;;  %v770_v45 = vld [vmem:[#allocation2 + $0x78] sm:$0xff]  ;;  %v106_v46 = vadd.f32 %v766_v43, %v764_v42  ;;  %v155_v16 = vadd.s32 4294967288, %v150_v3 }
  0x1a   :  { %68 = vadd.xlane.f32.xlu0 %v67_v17  ;;  %v82_v47 = vadd.f32 %v770_v45, %v768_v44  ;;  %v132_v49 = vld [vmem:[%s866_s1 + $0x38] sm:$0xff]  ;;  %v131_v50 = vld [vmem:[%s866_s1 + $0x30] sm:$0xff]  ;;  %v129_v52 = vld [vmem:[%s866_s1 + $0x20] sm:$0xff]  ;;  %v162_v17 = vadd.s32 4294967280, %v150_v3 }
  0x1b   :  { %571 = vmatpush3.msra.mxu0 %v132_v49  ;;  %v128_v53 = vld [vmem:[%s866_s1 + $0x18] sm:$0xff]  ;;  %v127_v54 = vld [vmem:[%s866_s1 + $0x10] sm:$0xff]  ;;  %v126_v55 = vld [vmem:[%s866_s1 + $0x8] sm:$0xff] }
  0x1c   :  { %572 = vmatprep.subr.mxu0 %v651_v48  ;;  %v125_v56 = vld [vmem:[%s866_s1] sm:$0xff] }
  0x1d   :  { %95 = vadd.xlane.f32.xlu1 %v94_v22  ;;  %573 = vmatpush3.msra.mxu0 %v131_v50  ;;  %v169_v22 = vadd.s32 4294967272, %v150_v3 }
  0x1e   :  { %71 = vadd.xlane.f32.xlu0 %v70_v23  ;;  %574 = vmatprep.subr.mxu0 %v651_v48  ;;  %v176_v23 = vadd.s32 4294967264, %v150_v3 }
  0x1f   :  { %575 = vmatpush3.msra.mxu0 %v130_v51 }
  0x20   :  { %576 = vmatprep.subr.mxu0 %v651_v48  ;;  %v179_v49 = vsub.s32 %v176_v23, %v800_v10  ;;  %v197_v23 = vadd.s32 4294967240, %v150_v3 }
  0x21   :  { %98 = vadd.xlane.f32.xlu1 %v97_v28  ;;  %577 = vmatpush3.msra.mxu0 %v129_v52 }
  0x22   :  { %74 = vadd.xlane.f32.xlu0 %v73_v29  ;;  %578 = vmatprep.subr.mxu0 %v651_v48  ;;  %v183_v29 = vadd.s32 4294967256, %v150_v3 }
  0x23   :  { %579 = vmatpush3.msra.mxu0 %v128_v53 }
  0x24   :  { %580 = vmatprep.subr.mxu0 %v651_v48  ;;  %v186_v52 = vsub.s32 %v183_v29, %v800_v10 }
  0x25   :  { %101 = vadd.xlane.f32.xlu1 %v100_v34  ;;  %581 = vmatpush3.msra.mxu0 %v127_v54  ;;  %v153_v34 = vsub.s32 %v150_v3, %v800_v10 }
  0x26   :  { %77 = vadd.xlane.f32.xlu0 %v76_v35  ;;  %582 = vmatprep.subr.mxu0 %v651_v48 }
  0x27   :  { %583 = vmatpush3.msra.mxu0 %v126_v55 }
  0x28   :  { %584 = vmatprep.subr.mxu0 %v651_v48  ;;  %v172_v48 = vsub.s32 %v169_v22, %v800_v10 }
  0x29   :  { %104 = vadd.xlane.f32.xlu1 %v103_v40  ;;  %585 = vmatpush3.msra.mxu0 %v125_v56  ;;  %v158_v40 = vsub.s32 %v155_v16, %v800_v10 }
  0x2a   :  { %80 = vadd.xlane.f32.xlu0 %v79_v41  ;;  %v165_v41 = vsub.s32 %v162_v17, %v800_v10 }
  0x2d   :  { %107 = vadd.xlane.f32.xlu1 %v106_v46  ;;  %v190_v46 = vadd.s32 4294967248, %v150_v3  ;;  %v200_v3 = vsub.s32 %v197_v23, %v800_v10 }
  0x2e   :  { %83 = vadd.xlane.f32.xlu0 %v82_v47 }
  0x9a   :  { %v87_v57 = vpop.xlane.xlu1 %86 }
  0x9b   :  { %v63_v58 = vpop.xlane.xlu0 %62  ;;  %v117_v54 = vmul.f32 0.00390625, %v87_v57 }
  0x9c   :  { %v109_v16 = vmul.f32 0.00390625, %v63_v58 }
  0x9d   :  { %v207_v37 = vrot.slane %v117_v54, %v153_v34 }
  0x9e   :  { %v90_v59 = vpop.xlane.xlu1 %89  ;;  %v154_v19 = vrot.slane %v109_v16, %v153_v34 }
  0x9f   :  { %v66_v60 = vpop.xlane.xlu0 %65  ;;  %v118_v47 = vmul.f32 0.00390625, %v90_v59  ;;  %v193_v59 = vsub.s32 %v190_v46, %v800_v10 }
  0xa0   :  { %v110_v50 = vmul.f32 0.00390625, %v66_v60 }
  0xa1   :  { %v211_v22 = vrot.slane %v118_v47, %v158_v40 }
  0xa2   :  { %v93_v62 = vpop.xlane.xlu1 %92  ;;  %v159_v60 = vrot.slane %v110_v50, %v158_v40 }
  0xa3   :  { %v69_v63 = vpop.xlane.xlu0 %68  ;;  %v119_v51 = vmul.f32 0.00390625, %v93_v62  ;;  %v212_v46 = vsel %vm160_vm1, %v211_v22, %v207_v37  ;;  %v319_v22 = vld [vmem:[%s867_s2] sm:$0xf]  ;;  %s653_s2 = smov [#allocation5]  }
  0xa4   :  { %v111_v55 = vmul.f32 0.00390625, %v69_v63  ;;  %v161_v40 = vsel %vm160_vm1, %v159_v60, %v154_v19  ;;  %590 = vmatpush3.msk.msra.mxu1 %vm324_vm10, %v319_v22  ;;  %s543_s8 = sshll.u32 %s653_s2, 4  ;;  %s544_s8 = int_to_ptr.vmem [resolvable:$true] %s543_s8 }
  0xa5   :  { %v216_v62 = vrot.slane %v119_v51, %v165_v41  ;;  %s624_s9 = scalar_lea.vmem %s544_s8, 4096  ;;  %p629_p6 = scmp.lt.s32.totalorder %s544_s8, %s544_s8 }
  0xa6   :  { %v96_v7 = vpop.xlane.xlu1 %95  ;;  %v166_v57 = vrot.slane %v111_v55, %v165_v41  ;;  %p625_p5 = scmp.ne.s32.totalorder %s544_s8, %s624_s9  ;;  %p630_p7 = scmp.lt.s32.totalorder %s624_s9, %s624_s9 }
  0xa7   :  { %v72_v11 = vpop.xlane.xlu0 %71  ;;  %v120_v56 = vmul.f32 0.00390625, %v96_v7  ;;  %v217_v50 = vsel %vm167_vm2, %v216_v62, %v212_v46 }
  0xa8   :  { %v112_v17 = vmul.f32 0.00390625, %v72_v11  ;;  %v168_v54 = vsel %vm167_vm2, %v166_v57, %v161_v40  ;;  %p631_p8 = por %p630_p7, %p629_p6 }
  0xa9   :  { %v221_v63 = vrot.slane %v120_v56, %v172_v48 }
  0xaa   :  { %v99_v28 = vpop.xlane.xlu1 %98  ;;  %v173_v58 = vrot.slane %v112_v17, %v172_v48  ;;  %p632_p9 = pnand %p631_p8, %p625_p5 }
  0xab   :  { %v75_v35 = vpop.xlane.xlu0 %74  ;;  %v121_v43 = vmul.f32 0.00390625, %v99_v28  ;;  %v222_v34 = vsel %vm174_vm3, %v221_v63, %v217_v50 }
  0xac   :  { %v113_v42 = vmul.f32 0.00390625, %v75_v35  ;;  %v175_v37 = vsel %vm174_vm3, %v173_v58, %v168_v54 }
  0xad   :  { %v226_v11 = vrot.slane %v121_v43, %v179_v49 }
  0xae   :  { %v102_v53 = vpop.xlane.xlu1 %101  ;;  %v180_v47 = vrot.slane %v113_v42, %v179_v49 }
  0xaf   :  { %v78_v61 = vpop.xlane.xlu0 %77  ;;  %v122_v31 = vmul.f32 0.00390625, %v102_v53 }
  0xb0   :  { %v114_v30 = vmul.f32 0.00390625, %v78_v61  ;;  %v182_v19 = vsel %vm181_vm4, %v180_v47, %v175_v37  ;;  %v441_v47 = vsub.s32 1, %v800_v10 }
  0xb1   :  { %v231_v35 = vrot.slane %v122_v31, %v186_v52  ;;  %v227_v31 = vsel %vm181_vm4, %v226_v11, %v222_v34  ;;  %v406_v11 = vsub.s32 0, %v800_v10 }
  0xb2   :  { %v105_v29 = vpop.xlane.xlu1 %104  ;;  %v187_v51 = vrot.slane %v114_v30, %v186_v52 }
  0xb3   :  { %v123_v7 = vmul.f32 0.00390625, %v105_v29  ;;  %v81_v36 = vpop.xlane.xlu0 %80  ;;  %v232_v49 = vsel %vm188_vm5, %v231_v35, %v227_v31 }
  0xb4   :  { %v115_v28 = vmul.f32 0.00390625, %v81_v36  ;;  %v189_v52 = vsel %vm188_vm5, %v187_v51, %v182_v19 }
  0xb5   :  { %v236_v53 = vrot.slane %v123_v7, %v193_v59 }
  0xb6   :  { %v108_v41 = vpop.xlane.xlu1 %107  ;;  %v194_v48 = vrot.slane %v115_v28, %v193_v59 }
  0xb7   :  { %v124_v43 = vmul.f32 0.00390625, %v108_v41  ;;  %v84_v36 = vpop.xlane.xlu0 %83  ;;  %v237_v55 = vsel %vm195_vm6, %v236_v53, %v232_v49 }
  0xb8   :  { %v116_v42 = vmul.f32 0.00390625, %v84_v36  ;;  %v196_v61 = vsel %vm195_vm6, %v194_v48, %v189_v52 }
  0xb9   :  { %v241_v30 = vrot.slane %v124_v43, %v200_v3 }
  0xba   :  { %v201_v56 = vrot.slane %v116_v42, %v200_v3 }
  0xbb   :  { %v242_v16 = vsel %vm202_vm7, %v241_v30, %v237_v55  ;;  %v883_v55 = vld [vmem:[#allocation8_spill] sm:$0xff] }
  0xbc   :  { %v203_v17 = vsel %vm202_vm7, %v201_v56, %v196_v61  ;;  %v884_v61 = vld [vmem:[#allocation11_spill] sm:$0xff] }
  0xbd   :  { %v244_v59 = vsel %vm243_vm8, %v242_v16, %v203_v17  ;;  %v885_v17 = vld [vmem:[#allocation12_spill] sm:$0xff] }
  0xbe   :  { %587 = vmatmul.mubr.msk.f32.vlgmr.msra.gmra.mxu0 %vm245_vm9, %v244_v59  ;;  %v887_v59 = vld [vmem:[#allocation10_spill] sm:$0xff] }
 0x17e   :  { %v314_v23 = vpop.f32.mrf.mxu0 }
 0x17f   :  { %v318_v60 = vmax.f32 %v314_v23, 0.0  ;;  %v888_v23 = vld [vmem:[#allocation13_spill] sm:$0xff] }
 0x180   :  { %v588_v62 = vpop.f32.mrf.mxu0 }
 0x181   :  { %592 = vmatmul.mubr.msk.f32.vlgmr.msra.gmra.mxu1 %vm320_vm11, %v318_v60  ;;  %v889_v62 = vld [vmem:[#allocation14_spill] sm:$0xff] }
 0x241   :  { %v394_v29 = vpop.f32.mrf.mxu1 }
 0x242   :  { %v558_v57 = vmul.f32 -1.442695, %v394_v29 }
 0x243   :  { %v593_v63 = vpop.f32.mrf.mxu1 }
 0x244   :  { %600 = vpow2.f32 %v558_v57 }
 0x251   :  { %v601_v7 = vpop.eup %600 }
 0x252   :  { %v401_v58 = vadd.f32 1.0, %v601_v7 }
 0x254   :  { %602 = vrcp.f32 %v401_v58 }
 0x261   :  { %v603_v28 = vpop.eup %602 }
 0x262   :  { %v407_v46 = vrot.slane %v603_v28, %v406_v11  ;;  %v442_v35 = vrot.slane %v603_v28, %v441_v47 }
 0x264   :  { %413 = vbcast.lane.b32.xlu1 %v407_v46, 264  ;;  %409 = vbcast.lane.b32.xlu0 %v407_v46, 256 }
 0x268   :  { %417 = vbcast.lane.b32.xlu1 %v407_v46, 272  ;;  %425 = vbcast.lane.b32.xlu0 %v407_v46, 288 }
 0x26c   :  { %421 = vbcast.lane.b32.xlu1 %v407_v46, 280  ;;  %433 = vbcast.lane.b32.xlu0 %v407_v46, 304 }
 0x270   :  { %429 = vbcast.lane.b32.xlu1 %v407_v46, 296  ;;  %444 = vbcast.lane.b32.xlu0 %v442_v35, 256 }
 0x274   :  { %437 = vbcast.lane.b32.xlu1 %v407_v46, 312  ;;  %452 = vbcast.lane.b32.xlu0 %v442_v35, 272 }
 0x278   :  { %448 = vbcast.lane.b32.xlu1 %v442_v35, 264  ;;  %460 = vbcast.lane.b32.xlu0 %v442_v35, 288 }
 0x27c   :  { %456 = vbcast.lane.b32.xlu1 %v442_v35, 280  ;;  %468 = vbcast.lane.b32.xlu0 %v442_v35, 304 }
 0x280   :  { %464 = vbcast.lane.b32.xlu1 %v442_v35, 296 }
 0x284   :  { %472 = vbcast.lane.b32.xlu1 %v442_v35, 312 }
 0x2d6   :  { %v414_v3 = vpop.permute.xlu1 %413  ;;  %v410_v40 = vpop.permute.xlu0 %409 }
 0x2d7   :  { %v476_v50 = vmul.f32 %v414_v3, %v696_v8  ;;  %v477_v51 = vmul.f32 %v414_v3, %v698_v9  ;;  %v474_v10 = vmul.f32 %v410_v40, %v684_v2  ;;  %v475_v53 = vmul.f32 %v410_v40, %v688_v4 }
 0x2d9   :  { %508 = vst [vmem:[#allocation5 + $0x10] sm:$0xff] %v476_v50  ;;  %509 = vst [vmem:[#allocation5 + $0x18] sm:$0xff] %v477_v51 }
 0x2da   :  { %506 = vst [vmem:[#allocation5] sm:$0xff] %v474_v10  ;;  %507 = vst [vmem:[#allocation5 + $0x8] sm:$0xff] %v475_v53  ;;  %v418_v41 = vpop.permute.xlu1 %417  ;;  %v426_v54 = vpop.permute.xlu0 %425 }
 0x2db   :  { %v478_v34 = vmul.f32 %v418_v41, %v708_v14  ;;  %v479_v48 = vmul.f32 %v418_v41, %v710_v15  ;;  %v482_v43 = vmul.f32 %v426_v54, %v732_v26  ;;  %v483_v8 = vmul.f32 %v426_v54, %v734_v27 }
 0x2dd   :  { %510 = vst [vmem:[#allocation5 + $0x20] sm:$0xff] %v478_v34  ;;  %511 = vst [vmem:[#allocation5 + $0x28] sm:$0xff] %v479_v48 }
 0x2de   :  { %514 = vst [vmem:[#allocation5 + $0x40] sm:$0xff] %v482_v43  ;;  %515 = vst [vmem:[#allocation5 + $0x48] sm:$0xff] %v483_v8  ;;  %v422_v2 = vpop.permute.xlu1 %421  ;;  %v434_v4 = vpop.permute.xlu0 %433 }
 0x2df   :  { %v480_v9 = vmul.f32 %v422_v2, %v720_v20  ;;  %v481_v36 = vmul.f32 %v422_v2, %v722_v21  ;;  %v486_v37 = vmul.f32 %v434_v4, %v756_v38  ;;  %v487_v14 = vmul.f32 %v434_v4, %v758_v39 }
 0x2e1   :  { %512 = vst [vmem:[#allocation5 + $0x30] sm:$0xff] %v480_v9  ;;  %513 = vst [vmem:[#allocation5 + $0x38] sm:$0xff] %v481_v36 }
 0x2e2   :  { %518 = vst [vmem:[#allocation5 + $0x60] sm:$0xff] %v486_v37  ;;  %519 = vst [vmem:[#allocation5 + $0x68] sm:$0xff] %v487_v14  ;;  %v430_v15 = vpop.permute.xlu1 %429  ;;  %v445_v26 = vpop.permute.xlu0 %444 }
 0x2e3   :  { %v484_v27 = vmul.f32 %v430_v15, %v744_v32  ;;  %v485_v31 = vmul.f32 %v430_v15, %v746_v33  ;;  %v490_v42 = vmul.f32 %v445_v26, %v680_v0  ;;  %v491_v20 = vmul.f32 %v445_v26, %v682_v1 }
 0x2e5   :  { %516 = vst [vmem:[#allocation5 + $0x50] sm:$0xff] %v484_v27  ;;  %517 = vst [vmem:[#allocation5 + $0x58] sm:$0xff] %v485_v31 }
 0x2e6   :  { %522 = vst [vmem:[#allocation5 + $0x80] sm:$0xff] %v490_v42  ;;  %523 = vst [vmem:[#allocation5 + $0x88] sm:$0xff] %v491_v20  ;;  %v438_v21 = vpop.permute.xlu1 %437  ;;  %v453_v38 = vpop.permute.xlu0 %452 }
 0x2e7   :  { %v488_v39 = vmul.f32 %v438_v21, %v768_v44  ;;  %v489_v19 = vmul.f32 %v438_v21, %v770_v45  ;;  %v494_v49 = vmul.f32 %v453_v38, %v704_v12  ;;  %v495_v32 = vmul.f32 %v453_v38, %v706_v13 }
 0x2e9   :  { %520 = vst [vmem:[#allocation5 + $0x70] sm:$0xff] %v488_v39  ;;  %521 = vst [vmem:[#allocation5 + $0x78] sm:$0xff] %v489_v19 }
 0x2ea   :  { %526 = vst [vmem:[#allocation5 + $0xa0] sm:$0xff] %v494_v49  ;;  %527 = vst [vmem:[#allocation5 + $0xa8] sm:$0xff] %v495_v32  ;;  %v449_v0 = vpop.permute.xlu1 %448  ;;  %v461_v1 = vpop.permute.xlu0 %460 }
 0x2eb   :  { %v492_v33 = vmul.f32 %v449_v0, %v690_v5  ;;  %v493_v30 = vmul.f32 %v449_v0, %v692_v6  ;;  %v498_v52 = vmul.f32 %v461_v1, %v728_v24  ;;  %v499_v44 = vmul.f32 %v461_v1, %v730_v25  ;;  %v886_v24 = vld [vmem:[#allocation9_spill] sm:$0xff] }
 0x2ed   :  { %524 = vst [vmem:[#allocation5 + $0x90] sm:$0xff] %v492_v33  ;;  %525 = vst [vmem:[#allocation5 + $0x98] sm:$0xff] %v493_v30 }
 0x2ee   :  { %530 = vst [vmem:[#allocation5 + $0xc0] sm:$0xff] %v498_v52  ;;  %531 = vst [vmem:[#allocation5 + $0xc8] sm:$0xff] %v499_v44  ;;  %v457_v12 = vpop.permute.xlu1 %456  ;;  %v469_v13 = vpop.permute.xlu0 %468 }
 0x2ef   :  { %v496_v45 = vmul.f32 %v457_v12, %v716_v18  ;;  %v497_v56 = vmul.f32 %v457_v12, %v883_v55  ;;  %v502_v16 = vmul.f32 %v469_v13, %v884_v61  ;;  %v503_v5 = vmul.f32 %v469_v13, %v885_v17 }
 0x2f1   :  { %528 = vst [vmem:[#allocation5 + $0xb0] sm:$0xff] %v496_v45  ;;  %529 = vst [vmem:[#allocation5 + $0xb8] sm:$0xff] %v497_v56 }
 0x2f2   :  { %534 = vst [vmem:[#allocation5 + $0xe0] sm:$0xff] %v502_v16  ;;  %535 = vst [vmem:[#allocation5 + $0xe8] sm:$0xff] %v503_v5  ;;  %v465_v6 = vpop.permute.xlu1 %464 }
 0x2f3   :  { %v500_v25 = vmul.f32 %v465_v6, %v886_v24  ;;  %v501_v22 = vmul.f32 %v465_v6, %v887_v59 }
 0x2f5   :  { %532 = vst [vmem:[#allocation5 + $0xd0] sm:$0xff] %v500_v25  ;;  %533 = vst [vmem:[#allocation5 + $0xd8] sm:$0xff] %v501_v22 }
 0x2f6   :  { %v473_v18 = vpop.permute.xlu1 %472 }
 0x2f7   :  { %v504_v60 = vmul.f32 %v473_v18, %v888_v23  ;;  %v505_v29 = vmul.f32 %v473_v18, %v889_v62 }
 0x2f9   :  { %536 = vst [vmem:[#allocation5 + $0xf0] sm:$0xff] %v504_v60  ;;  %537 = vst [vmem:[#allocation5 + $0xf8] sm:$0xff] %v505_v29 }
 0x2fa   :  { %635 = shalt.err (!%p632_p9)
}
 0x2fb   :  { %549 = dma.vmem_to_hbm [thread:$0]  %s544_s8, 4096, %s868_s3, [#allocation4], %s649_s15, %s649_s15, %s650_s16  }
 0x2fc   :  { %646 = dma.done.wait [#allocation4], 4096  }
 0x2fd   :  { %647 = vsyncadd [#allocation4], 4294963200 }
 0x2fe   :  { %553 = vsyncpa [#allocation3], 1 }
 0x2ff   :  { %554 = vsyncpa [#allocation4], 1 }

</bundles_post_ra>
